<compile_context>
chip_gen: v7x
topology: tpu7x:2x2x1
jax: 0.10.0
libtpu: 0.0.40
codegen_flags: <defaults>
</compile_context>

<pallas_src>
import math

import jax
import jax.numpy as jnp
from jax.experimental import pallas as pl

LANES = 128      # every activation lives in one (B, 128) lane space
SLOT = 128       # rows per packed weight slot (contraction dim is always 128)
BIAS_ROW = 120   # row inside each slot holding the (1, 128) bias
                 # (lane 120 of every activation is provably zero, so including
                 #  this row in the matmul contributes nothing)


# ----------------------------------------------------------------------------
# Parameter initialization (Linear(init='xavier'): stdv = sqrt(1/((in+out)/2)),
# bias = 0).  Weights are stored transposed to (in, out).
# ----------------------------------------------------------------------------
def init_linear(key, din, dout, gain=1.0):
    d = (din + dout) / 2.0
    stdv = gain * math.sqrt(1.0 / d)
    w_t = stdv * jax.random.normal(key, (din, dout), jnp.float32)   # (in, out)
    b = jnp.zeros((dout,), jnp.float32)
    return (w_t, b)


def init_mlp(key, layer_info):
    keys = jax.random.split(key, len(layer_info) - 1)
    return [init_linear(keys[i], layer_info[i], layer_info[i + 1])
            for i in range(len(layer_info) - 1)]


def multivae_init(key, in_blocks, in_shared, out_shared, out_blocks):
    # TODO(synk): only MLP (-1) blocks supported; CNN (-2) blocks not implemented.
    assert all(b[0] == -1 for b in in_blocks + out_blocks)
    keys = jax.random.split(key, len(in_blocks) + len(out_blocks) + 2)
    k = iter(keys)
    return {
        "in_models": [init_mlp(next(k), blk[1:]) for blk in in_blocks],
        "encoder": init_mlp(next(k), in_shared),
        "decoder": init_mlp(next(k), out_shared),
        "out_models": [init_mlp(next(k), blk[1:]) for blk in out_blocks],
    }


# ----------------------------------------------------------------------------
# One-time packing: every weight & bias goes into ONE (n_slots*128, 128) buffer.
#
#   * weight rows sit at the lane offsets where the layer's input lives,
#   * weight columns sit at the lane offsets where its output should land
#     (parallel branches become block-diagonal -> one fused matmul per layer),
#   * all padding lanes of every activation stay exactly 0 (zero weight
#     columns, zero bias, relu(0)=tanh(0)=0), so no in-kernel concat/slice.
# ----------------------------------------------------------------------------
def prepare_params(params):
    in_models = params["in_models"]
    encoder = params["encoder"]
    decoder = params["decoder"]
    out_models = params["out_models"]

    mod_depth = len(in_models[0])
    head_depth = len(out_models[0])
    assert all(len(m) == mod_depth for m in in_models), "equal-depth modality MLPs"
    assert all(len(m) == head_depth for m in out_models), "equal-depth head MLPs"

    z_d = encoder[-1][0].shape[1] // 2
    in_dims = [m[0][0].shape[0] for m in in_models]
    out_slice = [m[-1][0].shape[1] for m in in_models]      # modality-encoder widths
    head_out = [m[-1][0].shape[1] for m in out_models]      # 2*out_dim per head

    assert encoder[0][0].shape[0] == sum(out_slice)
    assert decoder[0][0].shape[0] == z_d
    for i, m in enumerate(out_models):
        assert m[0][0].shape[0] == out_slice[i]

    n_slots = mod_depth + len(encoder) + len(decoder) + head_depth
    W = jnp.zeros((n_slots * SLOT, LANES), jnp.float32)

    def place(W, slot, w_t, b, row_off, col_off):
        din, dout = w_t.shape
        assert row_off + din <= BIAS_ROW, "weight rows collide with bias row"
        assert col_off + dout <= BIAS_ROW, "columns must stay clear of lane 120"
        r0 = slot * SLOT
        W = W.at[r0 + row_off:r0 + row_off + din, col_off:col_off + dout].set(w_t)
        W = W.at[r0 + BIAS_ROW, col_off:col_off + dout].set(b)
        return W

    slot = 0

    # ---- modality encoders: fused block-diagonal, ReLU on every layer ----
    # inputs packed at lanes [2*z_d + cum(in_dims)]  (lanes [z_d:2*z_d] hold eps)
    row_offs, off = [], 2 * z_d
    for d in in_dims:
        row_offs.append(off)
        off += d
    assert off <= BIAS_ROW
    for L in range(mod_depth):
        col_offs, off = [], 0
        for m in in_models:
            col_offs.append(off)
            off += m[L][0].shape[1]
        assert off <= BIAS_ROW
        for i, m in enumerate(in_models):
            W = place(W, slot, m[L][0], m[L][1], row_offs[i], col_offs[i])
        row_offs = col_offs
        slot += 1
    # After the last modality layer, the column layout equals the reference's
    # concat layout, so the shared encoder consumes it directly.

    # ---- shared encoder (relu ... relu, tanh) ----
    for (w_t, b) in encoder:
        W = place(W, slot, w_t, b, 0, 0)
        slot += 1
    enc_last_slot = slot - 1

    # ---- shared decoder (relu everywhere) ----
    # Layer 0 rows duplicated at [0:z_d] and [z_d:2*z_d] so that the kernel's
    # reparameterization vector (mu | exp(logstd)*eps) contracts to exactly
    # z @ W0 = (mu + exp(logstd)*eps) @ W0.
    for L, (w_t, b) in enumerate(decoder):
        W = place(W, slot, w_t, b, 0, 0)
        if L == 0:
            W = place(W, slot, w_t, b, z_d, 0)
        slot += 1

    # ---- output heads: fused block-diagonal ----
    # Head i consumes decoder-output lanes [cum(out_slice)_i : +out_slice[i]].
    row_offs, off = [], 0
    for s in out_slice:
        row_offs.append(off)
        off += s
    for L in range(head_depth):
        base = 2 * z_d if L == head_depth - 1 else 0  # last layer -> packed-output lanes
        col_offs, off = [], base
        for m in out_models:
            col_offs.append(off)
            off += m[L][0].shape[1]
        assert off <= BIAS_ROW
        for i, m in enumerate(out_models):
            W = place(W, slot, m[L][0], m[L][1], row_offs[i], col_offs[i])
        row_offs = col_offs
        slot += 1
    assert slot == n_slots

    acts = (["relu"] * mod_depth                              # appended ReLU -> all relu
            + ["relu"] * (len(encoder) - 1) + ["tanh"]        # Sequential(..., Tanh)
            + ["relu"] * len(decoder)                         # Sequential(..., ReLU)
            + ["relu"] * (head_depth - 1) + ["none"])         # plain MLP head

    return {
        "wpack": W,
        "acts": tuple(acts),
        "enc_last_slot": enc_last_slot,
        "z_d": z_d,
        "in_dims": tuple(in_dims),
        "head_out": tuple(head_out),
    }


# ----------------------------------------------------------------------------
# Fused kernel: 3 operands total (packed input, packed weights, packed output).
# ----------------------------------------------------------------------------
def _build_kernel(acts, enc_last_slot, z_d, sample):
    def kernel(x_ref, w_ref, o_ref):
        x = x_ref[...]                                           # (B, 128)
        lane = jax.lax.broadcasted_iota(jnp.int32, x.shape, 1)
        eps_vec = jnp.where((lane >= z_d) & (lane < 2 * z_d), x, 0.0)

        h = x
        u = x
        for j, act in enumerate(acts):
            w = w_ref[pl.ds(j * SLOT, SLOT), :]                  # (128,128) static slice
            b = w_ref[pl.ds(j * SLOT + BIAS_ROW, 1), :]          # (1,128) bias row
            h = jnp.dot(h, w, preferred_element_type=jnp.float32) + b
            if act == "relu":
                h = jnp.maximum(h, 0.0)
            elif act == "tanh":
                h = jnp.tanh(h)
            if j == enc_last_slot:
                u = h                                            # mu | logstd | zeros
                mu_part = jnp.where(lane < z_d, u, 0.0)
                if sample:
                    # v = mu at [0:z_d], exp(logstd)*eps at [z_d:2*z_d]; the
                    # decoder slot has duplicated rows so dot(v, W0) == z @ W0.
                    h = mu_part + jnp.exp(u) * eps_vec
                else:
                    h = mu_part
        # packed output: mu|logstd at lanes [0:2*z_d], head outputs at [2*z_d:...]
        o_ref[...] = u + h                                       # single 128-lane store

    return kernel


def multivae_forward(packed, xs, eps, sample=True):
    z_d = packed["z_d"]
    B = xs[0].shape[0]

    # Pack modality inputs + eps into a single lane-mapped (B, 128) array.
    x_in = jnp.zeros((B, LANES), jnp.float32)
    x_in = x_in.at[:, z_d:2 * z_d].set(eps.astype(jnp.float32))
    off = 2 * z_d
    for xm in xs:
        d = xm.shape[1]
        x_in = x_in.at[:, off:off + d].set(xm.astype(jnp.float32))
        off += d

    kernel = _build_kernel(packed["acts"], packed["enc_last_slot"], z_d, sample)
    out = pl.pallas_call(
        kernel,
        out_shape=jax.ShapeDtypeStruct((B, LANES), jnp.float32),
        # No grid / BlockSpecs: whole arrays become single VMEM blocks, so no
        # pipeline double-buffering or prologue/epilogue for a 1-step grid.
    )(x_in, packed["wpack"])

    mu = out[:, :z_d]
    logstd = out[:, z_d:2 * z_d]
    out_mu, out_logstd = [], []
    o = 2 * z_d
    for w in packed["head_out"]:
        d = w // 2
        out_mu.append(out[:, o:o + d])
        out_logstd.append(out[:, o + d:o + w])
        o += w
    return mu, logstd, out_mu, out_logstd


# ----------------------------------------------------------------------------
# Plain-JAX reference of the PyTorch forward (for validation only).
# ----------------------------------------------------------------------------
def ref_forward(params, xs, eps, sample=True):
    P = jax.lax.Precision.HIGHEST

    def lin(h, w, b):
        return jnp.dot(h, w, precision=P) + b

    outs = []
    for xm, layers in zip(xs, params["in_models"]):
        h = xm
        for (w, b) in layers:                     # appended ReLU -> relu on every layer
            h = jnp.maximum(lin(h, w, b), 0.0)
        outs.append(h)
    out_slice = [o.shape[1] for o in outs]
    h = jnp.concatenate(outs, axis=1)

    enc = params["encoder"]
    for (w, b) in enc[:-1]:
        h = jnp.maximum(lin(h, w, b), 0.0)
    h = jnp.tanh(lin(h, enc[-1][0], enc[-1][1]))
    z_d = h.shape[1] // 2
    mu, logstd = h[:, :z_d], h[:, z_d:]
    z = mu + jnp.exp(logstd) * eps if sample else mu

    dec = params["decoder"]
    h = z
    for (w, b) in dec[:-1]:
        h = jnp.maximum(lin(h, w, b), 0.0)
    h = jnp.maximum(lin(h, dec[-1][0], dec[-1][1]), 0.0)

    out_mu, out_logstd = [], []
    begin = 0
    for i, layers in enumerate(params["out_models"]):
        g = h[:, begin:begin + out_slice[i]]
        for (w, b) in layers[:-1]:
            g = jnp.maximum(lin(g, w, b), 0.0)
        g = lin(g, layers[-1][0], layers[-1][1])
        d = g.shape[1] // 2
        out_mu.append(g[:, :d])
        out_logstd.append(g[:, d:])
        begin += out_slice[i]
    return mu, logstd, out_mu, out_logstd


# ----------------------------------------------------------------------------
if __name__ == "__main__":
    # Configuration (mirrors the PyTorch constructor arguments):
    in_blocks = [[-1, 6, 32, 16], [-1, 10, 32, 16]]   # two MLP modalities
    in_shared = [32, 32, 16]                          # -> z_d = 8
    out_shared = [8, 32, 32]
    out_blocks = [[-1, 16, 32, 12], [-1, 16, 32, 20]]

    key = jax.random.PRNGKey(0)
    kp, kx1, kx2, keps = jax.random.split(key, 4)

    params = multivae_init(kp, in_blocks, in_shared, out_shared, out_blocks)
    packed = prepare_params(params)       # one-time packing into a single buffer

    batch = 2
    x1 = jax.random.normal(kx1, (batch, 6), jnp.float32)
    x2 = jax.random.normal(kx2, (batch, 10), jnp.float32)
    z_d = in_shared[-1] // 2
    eps = jax.random.normal(keps, (batch, z_d), jnp.float32)

    fwd = jax.jit(lambda a, b, e: multivae_forward(packed, [a, b], e, sample=True))
    mu, logstd, out_mu, out_logstd = fwd(x1, x2, eps)
    jax.block_until_ready((mu, logstd, out_mu, out_logstd))

    assert mu.shape == (batch, z_d) and logstd.shape == (batch, z_d)
    assert out_mu[0].shape == (batch, 6) and out_logstd[0].shape == (batch, 6)
    assert out_mu[1].shape == (batch, 10) and out_logstd[1].shape == (batch, 10)

    # Validate against a plain-JAX reference of the PyTorch forward.
    r_mu, r_ls, r_omu, r_ols = ref_forward(params, [x1, x2], eps, sample=True)

    def maxerr(a, b):
        return float(jnp.max(jnp.abs(a - b)))

    errs = [maxerr(mu, r_mu), maxerr(logstd, r_ls),
            maxerr(out_mu[0], r_omu[0]), maxerr(out_logstd[0], r_ols[0]),
            maxerr(out_mu[1], r_omu[1]), maxerr(out_logstd[1], r_ols[1])]
    # Loose tolerance only to accommodate MXU pass / accumulation-order differences.
    assert max(errs) < 5e-2, f"kernel/reference mismatch: {errs}"

    print("KERNEL_OK")
</pallas_src>

<mosaic_0001>
module attributes {stable_mosaic.version = 11 : i64} {
  func.func @kernel(%arg0: memref<2x128xf32, #tpu.memory_space<vmem>>, %arg1: memref<1024x128xf32, #tpu.memory_space<vmem>>, %arg2: memref<2x128xf32, #tpu.memory_space<vmem>>) attributes {dimension_semantics = [], scalar_prefetch = 0 : i64, scratch_operands = 0 : i64, tpu.core_type = #tpu.core_type<tc>} {
    %c0 = arith.constant 0 : index
    %c0_0 = arith.constant 0 : index
    %0 = vector.load %arg0[%c0, %c0_0] : memref<2x128xf32, #tpu.memory_space<vmem>>, vector<2x128xf32>
    %1 = tpu.iota {dimensions = array<i32: 1>} : vector<2x128xi32>
    %c8_i32 = arith.constant 8 : i32
    %2 = vector.broadcast %c8_i32 : i32 to vector<2x128xi32>
    %3 = arith.cmpi sge, %1, %2 : vector<2x128xi32>
    %c16_i32 = arith.constant 16 : i32
    %4 = vector.broadcast %c16_i32 : i32 to vector<2x128xi32>
    %5 = arith.cmpi slt, %1, %4 : vector<2x128xi32>
    %6 = arith.andi %3, %5 : vector<2x128xi1>
    %cst = arith.constant 0.000000e+00 : f32
    %7 = vector.broadcast %cst : f32 to vector<2x128xf32>
    %8 = arith.select %6, %0, %7 : vector<2x128xi1>, vector<2x128xf32>
    %c0_1 = arith.constant 0 : index
    %c0_2 = arith.constant 0 : index
    %9 = vector.load %arg1[%c0_1, %c0_2] : memref<1024x128xf32, #tpu.memory_space<vmem>>, vector<128x128xf32>
    %c120 = arith.constant 120 : index
    %c0_3 = arith.constant 0 : index
    %10 = vector.load %arg1[%c120, %c0_3] : memref<1024x128xf32, #tpu.memory_space<vmem>>, vector<1x128xf32>
    %cst_4 = arith.constant dense<0.000000e+00> : vector<2x128xf32>
    %11 = tpu.matmul %0, %9, %cst_4 {dimension_numbers = #tpu.dot_dimension_numbers<[1], [0], [0], [1], [0, 0, 1, 1], [], []>} : vector<2x128xf32>, vector<128x128xf32>, vector<2x128xf32> -> vector<2x128xf32>
    %12 = vector.broadcast %10 : vector<1x128xf32> to vector<2x128xf32>
    %13 = arith.addf %11, %12 : vector<2x128xf32>
    %cst_5 = arith.constant 0.000000e+00 : f32
    %14 = vector.broadcast %cst_5 : f32 to vector<2x128xf32>
    %15 = arith.maximumf %13, %14 : vector<2x128xf32>
    %c128 = arith.constant 128 : index
    %c0_6 = arith.constant 0 : index
    %16 = vector.load %arg1[%c128, %c0_6] : memref<1024x128xf32, #tpu.memory_space<vmem>>, vector<128x128xf32>
    %c248 = arith.constant 248 : index
    %c0_7 = arith.constant 0 : index
    %17 = vector.load %arg1[%c248, %c0_7] : memref<1024x128xf32, #tpu.memory_space<vmem>>, vector<1x128xf32>
    %cst_8 = arith.constant dense<0.000000e+00> : vector<2x128xf32>
    %18 = tpu.matmul %15, %16, %cst_8 {dimension_numbers = #tpu.dot_dimension_numbers<[1], [0], [0], [1], [0, 0, 1, 1], [], []>} : vector<2x128xf32>, vector<128x128xf32>, vector<2x128xf32> -> vector<2x128xf32>
    %19 = vector.broadcast %17 : vector<1x128xf32> to vector<2x128xf32>
    %20 = arith.addf %18, %19 : vector<2x128xf32>
    %cst_9 = arith.constant 0.000000e+00 : f32
    %21 = vector.broadcast %cst_9 : f32 to vector<2x128xf32>
    %22 = arith.maximumf %20, %21 : vector<2x128xf32>
    %c256 = arith.constant 256 : index
    %c0_10 = arith.constant 0 : index
    %23 = vector.load %arg1[%c256, %c0_10] : memref<1024x128xf32, #tpu.memory_space<vmem>>, vector<128x128xf32>
    %c376 = arith.constant 376 : index
    %c0_11 = arith.constant 0 : index
    %24 = vector.load %arg1[%c376, %c0_11] : memref<1024x128xf32, #tpu.memory_space<vmem>>, vector<1x128xf32>
    %cst_12 = arith.constant dense<0.000000e+00> : vector<2x128xf32>
    %25 = tpu.matmul %22, %23, %cst_12 {dimension_numbers = #tpu.dot_dimension_numbers<[1], [0], [0], [1], [0, 0, 1, 1], [], []>} : vector<2x128xf32>, vector<128x128xf32>, vector<2x128xf32> -> vector<2x128xf32>
    %26 = vector.broadcast %24 : vector<1x128xf32> to vector<2x128xf32>
    %27 = arith.addf %25, %26 : vector<2x128xf32>
    %cst_13 = arith.constant 0.000000e+00 : f32
    %28 = vector.broadcast %cst_13 : f32 to vector<2x128xf32>
    %29 = arith.maximumf %27, %28 : vector<2x128xf32>
    %c384 = arith.constant 384 : index
    %c0_14 = arith.constant 0 : index
    %30 = vector.load %arg1[%c384, %c0_14] : memref<1024x128xf32, #tpu.memory_space<vmem>>, vector<128x128xf32>
    %c504 = arith.constant 504 : index
    %c0_15 = arith.constant 0 : index
    %31 = vector.load %arg1[%c504, %c0_15] : memref<1024x128xf32, #tpu.memory_space<vmem>>, vector<1x128xf32>
    %cst_16 = arith.constant dense<0.000000e+00> : vector<2x128xf32>
    %32 = tpu.matmul %29, %30, %cst_16 {dimension_numbers = #tpu.dot_dimension_numbers<[1], [0], [0], [1], [0, 0, 1, 1], [], []>} : vector<2x128xf32>, vector<128x128xf32>, vector<2x128xf32> -> vector<2x128xf32>
    %33 = vector.broadcast %31 : vector<1x128xf32> to vector<2x128xf32>
    %34 = arith.addf %32, %33 : vector<2x128xf32>
    %35 = math.tanh %34 : vector<2x128xf32>
    %c8_i32_17 = arith.constant 8 : i32
    %36 = vector.broadcast %c8_i32_17 : i32 to vector<2x128xi32>
    %37 = arith.cmpi slt, %1, %36 : vector<2x128xi32>
    %cst_18 = arith.constant 0.000000e+00 : f32
    %38 = vector.broadcast %cst_18 : f32 to vector<2x128xf32>
    %39 = arith.select %37, %35, %38 : vector<2x128xi1>, vector<2x128xf32>
    %40 = math.exp %35 : vector<2x128xf32>
    %41 = arith.mulf %40, %8 : vector<2x128xf32>
    %42 = arith.addf %39, %41 : vector<2x128xf32>
    %c512 = arith.constant 512 : index
    %c0_19 = arith.constant 0 : index
    %43 = vector.load %arg1[%c512, %c0_19] : memref<1024x128xf32, #tpu.memory_space<vmem>>, vector<128x128xf32>
    %c632 = arith.constant 632 : index
    %c0_20 = arith.constant 0 : index
    %44 = vector.load %arg1[%c632, %c0_20] : memref<1024x128xf32, #tpu.memory_space<vmem>>, vector<1x128xf32>
    %cst_21 = arith.constant dense<0.000000e+00> : vector<2x128xf32>
    %45 = tpu.matmul %42, %43, %cst_21 {dimension_numbers = #tpu.dot_dimension_numbers<[1], [0], [0], [1], [0, 0, 1, 1], [], []>} : vector<2x128xf32>, vector<128x128xf32>, vector<2x128xf32> -> vector<2x128xf32>
    %46 = vector.broadcast %44 : vector<1x128xf32> to vector<2x128xf32>
    %47 = arith.addf %45, %46 : vector<2x128xf32>
    %cst_22 = arith.constant 0.000000e+00 : f32
    %48 = vector.broadcast %cst_22 : f32 to vector<2x128xf32>
    %49 = arith.maximumf %47, %48 : vector<2x128xf32>
    %c640 = arith.constant 640 : index
    %c0_23 = arith.constant 0 : index
    %50 = vector.load %arg1[%c640, %c0_23] : memref<1024x128xf32, #tpu.memory_space<vmem>>, vector<128x128xf32>
    %c760 = arith.constant 760 : index
    %c0_24 = arith.constant 0 : index
    %51 = vector.load %arg1[%c760, %c0_24] : memref<1024x128xf32, #tpu.memory_space<vmem>>, vector<1x128xf32>
    %cst_25 = arith.constant dense<0.000000e+00> : vector<2x128xf32>
    %52 = tpu.matmul %49, %50, %cst_25 {dimension_numbers = #tpu.dot_dimension_numbers<[1], [0], [0], [1], [0, 0, 1, 1], [], []>} : vector<2x128xf32>, vector<128x128xf32>, vector<2x128xf32> -> vector<2x128xf32>
    %53 = vector.broadcast %51 : vector<1x128xf32> to vector<2x128xf32>
    %54 = arith.addf %52, %53 : vector<2x128xf32>
    %cst_26 = arith.constant 0.000000e+00 : f32
    %55 = vector.broadcast %cst_26 : f32 to vector<2x128xf32>
    %56 = arith.maximumf %54, %55 : vector<2x128xf32>
    %c768 = arith.constant 768 : index
    %c0_27 = arith.constant 0 : index
    %57 = vector.load %arg1[%c768, %c0_27] : memref<1024x128xf32, #tpu.memory_space<vmem>>, vector<128x128xf32>
    %c888 = arith.constant 888 : index
    %c0_28 = arith.constant 0 : index
    %58 = vector.load %arg1[%c888, %c0_28] : memref<1024x128xf32, #tpu.memory_space<vmem>>, vector<1x128xf32>
    %cst_29 = arith.constant dense<0.000000e+00> : vector<2x128xf32>
    %59 = tpu.matmul %56, %57, %cst_29 {dimension_numbers = #tpu.dot_dimension_numbers<[1], [0], [0], [1], [0, 0, 1, 1], [], []>} : vector<2x128xf32>, vector<128x128xf32>, vector<2x128xf32> -> vector<2x128xf32>
    %60 = vector.broadcast %58 : vector<1x128xf32> to vector<2x128xf32>
    %61 = arith.addf %59, %60 : vector<2x128xf32>
    %cst_30 = arith.constant 0.000000e+00 : f32
    %62 = vector.broadcast %cst_30 : f32 to vector<2x128xf32>
    %63 = arith.maximumf %61, %62 : vector<2x128xf32>
    %c896 = arith.constant 896 : index
    %c0_31 = arith.constant 0 : index
    %64 = vector.load %arg1[%c896, %c0_31] : memref<1024x128xf32, #tpu.memory_space<vmem>>, vector<128x128xf32>
    %c1016 = arith.constant 1016 : index
    %c0_32 = arith.constant 0 : index
    %65 = vector.load %arg1[%c1016, %c0_32] : memref<1024x128xf32, #tpu.memory_space<vmem>>, vector<1x128xf32>
    %cst_33 = arith.constant dense<0.000000e+00> : vector<2x128xf32>
    %66 = tpu.matmul %63, %64, %cst_33 {dimension_numbers = #tpu.dot_dimension_numbers<[1], [0], [0], [1], [0, 0, 1, 1], [], []>} : vector<2x128xf32>, vector<128x128xf32>, vector<2x128xf32> -> vector<2x128xf32>
    %67 = vector.broadcast %65 : vector<1x128xf32> to vector<2x128xf32>
    %68 = arith.addf %66, %67 : vector<2x128xf32>
    %69 = arith.addf %35, %68 : vector<2x128xf32>
    %c0_34 = arith.constant 0 : index
    %c0_35 = arith.constant 0 : index
    %70 = vector.load %arg2[%c0_34, %c0_35] : memref<2x128xf32, #tpu.memory_space<vmem>>, vector<2x128xf32>
    tpu.vector_store %arg2[%c0_34, %c0_35], %69 {strides = array<i32>} : memref<2x128xf32, #tpu.memory_space<vmem>>, vector<2x128xf32>,
    return
  }
}

</mosaic_0001>

<bundles_post_ra>
// kernel: _lambda_.1
= control target key start
LH: loop header
LB: loop body
LE: loop exit
PB: predicated region body
PF: predicated region fallthrough
CT: control target
= control target key end

     0   :  { %7 = vsyncpa [#allocation3], 0  ;;  %s1430_s9 = smov [#allocation2]   ;;  %s1558_s0 = inlined_call_operand.vmem [shape: f32[2,128], index: 0, kind: input, shape index: {}]   ;;  %s1559_s1 = inlined_call_operand.hbm [shape: f32[1024,128], index: 1, kind: input, shape index: {}]   ;;  %s1560_s2 = inlined_call_operand.vmem [shape: f32[2,128], index: 2, kind: output, shape index: {}]  }
   0x1   :  { %s15_s10 = sshll.u32 %s1430_s9, 4  ;;  %s1406_s13 = scalar_lea.hbm %s1559_s1, 16384  ;;  %s16_s10 = int_to_ptr.vmem [resolvable:$true] %s15_s10 }
   0x2   :  { %p1407_p0 = scmp.ne.s32.totalorder %s1559_s1, %s1406_s13  ;;  %p1410_p1 = scmp.lt.u32.totalorder %s1406_s13, %s1559_s1 }
   0x4   :  { %p1412_p2 = pnand %p1410_p1, %p1407_p0 }
   0x6   :  { %1415 = shalt.err (!%p1412_p2)
}
   0x7   :  { %s1416_s18 = scalar_lea.vmem %s16_s10, 16384  ;;  %p1421_p4 = scmp.lt.s32.totalorder %s16_s10, %s16_s10 }
   0x8   :  { %p1417_p3 = scmp.ne.s32.totalorder %s16_s10, %s1416_s18  ;;  %p1422_p5 = scmp.lt.s32.totalorder %s1416_s18, %s1416_s18 }
   0xa   :  { %p1423_p6 = por %p1422_p5, %p1421_p4 }
   0xc   :  { %p1424_p7 = pnand %p1423_p6, %p1417_p3 }
   0xe   :  { %1427 = shalt.err (!%p1424_p7)
}
   0xf   :  { %s1431_s19 = smov 128   ;;  %s1432_s20 = smov 8  }
  0x10   :  { %21 = dma.hbm_to_vmem [thread:$0]  %s1559_s1, 16384, %s16_s10, [#allocation3], %s1431_s19, %s1431_s19, %s1432_s20  }
  0x11   :  { %1428 = dma.done.wait [#allocation3], 16384  }
  0x12   :  { %1429 = vsyncadd [#allocation3], 4294950912  ;;  %v1433_v0 = vmov 0.0|0.0   ;;  %vm1434_vm0 = vmmov 0   ;;  %v1435_v1 = vmov 0.0   ;;  %v32_v2 = vld [vmem:[#allocation2] sm:$0xff] }
  0x13   :  { %1204 = vmatprep.subr.bf16.mxu0 %v1433_v0  ;;  %956 = vmatprep.mubr.msk.f32.mxu0 %vm1434_vm0, %v1435_v1  ;;  %v33_v3 = vld [vmem:[#allocation2 + $0x8] sm:$0xff]  ;;  %v34_v4 = vld [vmem:[#allocation2 + $0x10] sm:$0xff]  ;;  %v35_v6 = vld [vmem:[#allocation2 + $0x18] sm:$0xff] }
  0x14   :  { %1228 = vmatprep.subr.bf16.mxu1 %v1433_v0  ;;  %991 = vmatprep.mubr.msk.f32.mxu1 %vm1434_vm0, %v1435_v1  ;;  %v1205_v5 = vpack.c.bf16 %v33_v3, %v32_v2  ;;  %v1208_v7 = vpack.c.bf16 %v35_v6, %v34_v4  ;;  %v36_v8 = vld [vmem:[#allocation2 + $0x20] sm:$0xff]  ;;  %v37_v9 = vld [vmem:[#allocation2 + $0x28] sm:$0xff]  ;;  %v126_v12 = vld [vmem:[#allocation2 + $0x90] sm:$0xff] }
  0x15   :  { %v124_v10 = vld [vmem:[#allocation2 + $0x80] sm:$0xff]  ;;  %v125_v11 = vld [vmem:[#allocation2 + $0x88] sm:$0xff]  ;;  %v127_v13 = vld [vmem:[#allocation2 + $0x98] sm:$0xff]  ;;  %v1211_v14 = vpack.c.bf16 %v37_v9, %v36_v8 }
  0x16   :  { %1206 = vmatpush3.bf16.msra.mxu0 %v1205_v5  ;;  %v1229_v15 = vpack.c.bf16 %v125_v11, %v124_v10  ;;  %v38_v16 = vld [vmem:[#allocation2 + $0x30] sm:$0xff]  ;;  %v39_v17 = vld [vmem:[#allocation2 + $0x38] sm:$0xff]  ;;  %v1232_v18 = vpack.c.bf16 %v127_v13, %v126_v12  ;;  %v128_v19 = vld [vmem:[#allocation2 + $0xa0] sm:$0xff] }
  0x17   :  { %1207 = vmatprep.subr.bf16.mxu0 %v1433_v0  ;;  %v129_v20 = vld [vmem:[#allocation2 + $0xa8] sm:$0xff]  ;;  %v1214_v21 = vpack.c.bf16 %v39_v17, %v38_v16  ;;  %v40_v22 = vld [vmem:[#allocation2 + $0x40] sm:$0xff]  ;;  %v130_v25 = vld [vmem:[#allocation2 + $0xb0] sm:$0xff] }
  0x18   :  { %1230 = vmatpush3.bf16.msra.mxu1 %v1229_v15  ;;  %v41_v23 = vld [vmem:[#allocation2 + $0x48] sm:$0xff]  ;;  %v1235_v24 = vpack.c.bf16 %v129_v20, %v128_v19  ;;  %v131_v26 = vld [vmem:[#allocation2 + $0xb8] sm:$0xff]  ;;  %v42_v28 = vld [vmem:[#allocation2 + $0x50] sm:$0xff] }
  0x19   :  { %1231 = vmatprep.subr.bf16.mxu1 %v1433_v0  ;;  %v1217_v27 = vpack.c.bf16 %v41_v23, %v40_v22  ;;  %v43_v29 = vld [vmem:[#allocation2 + $0x58] sm:$0xff]  ;;  %v1238_v30 = vpack.c.bf16 %v131_v26, %v130_v25  ;;  %v132_v31 = vld [vmem:[#allocation2 + $0xc0] sm:$0xff]  ;;  %v133_v32 = vld [vmem:[#allocation2 + $0xc8] sm:$0xff] }
  0x1a   :  { %1209 = vmatpush3.bf16.msra.mxu0 %v1208_v7  ;;  %v1220_v33 = vpack.c.bf16 %v43_v29, %v42_v28  ;;  %v44_v34 = vld [vmem:[#allocation2 + $0x60] sm:$0xff]  ;;  %v45_v35 = vld [vmem:[#allocation2 + $0x68] sm:$0xff]  ;;  %v1241_v36 = vpack.c.bf16 %v133_v32, %v132_v31  ;;  %v134_v37 = vld [vmem:[#allocation2 + $0xd0] sm:$0xff] }
  0x1b   :  { %1210 = vmatprep.subr.bf16.mxu0 %v1433_v0  ;;  %v135_v38 = vld [vmem:[#allocation2 + $0xd8] sm:$0xff]  ;;  %v1223_v39 = vpack.c.bf16 %v45_v35, %v44_v34  ;;  %v46_v40 = vld [vmem:[#allocation2 + $0x70] sm:$0xff]  ;;  %v136_v43 = vld [vmem:[#allocation2 + $0xe0] sm:$0xff] }
  0x1c   :  { %1233 = vmatpush3.bf16.msra.mxu1 %v1232_v18  ;;  %v47_v41 = vld [vmem:[#allocation2 + $0x78] sm:$0xff]  ;;  %v1244_v42 = vpack.c.bf16 %v135_v38, %v134_v37  ;;  %v137_v44 = vld [vmem:[#allocation2 + $0xe8] sm:$0xff]  ;;  %v1485_v47 = vld [vmem:[%s1558_s0] sm:$0x3] }
  0x1d   :  { %1234 = vmatprep.subr.bf16.mxu1 %v1433_v0  ;;  %v1226_v45 = vpack.c.bf16 %v47_v41, %v46_v40  ;;  %v1247_v46 = vpack.c.bf16 %v137_v44, %v136_v43  ;;  %v138_v48 = vld [vmem:[#allocation2 + $0xf0] sm:$0xff]  ;;  %v139_v49 = vld [vmem:[#allocation2 + $0xf8] sm:$0xff]  ;;  %v216_v51 = vld [vmem:[#allocation2 + $0x100] sm:$0xff] }
  0x1e   :  { %1212 = vmatpush3.bf16.msra.mxu0 %v1211_v14  ;;  %v1250_v50 = vpack.c.bf16 %v139_v49, %v138_v48  ;;  %v217_v52 = vld [vmem:[#allocation2 + $0x108] sm:$0xff]  ;;  %v218_v53 = vld [vmem:[#allocation2 + $0x110] sm:$0xff]  ;;  %v219_v55 = vld [vmem:[#allocation2 + $0x118] sm:$0xff] }
  0x1f   :  { %1213 = vmatprep.subr.bf16.mxu0 %v1433_v0  ;;  %v1253_v54 = vpack.c.bf16 %v217_v52, %v216_v51  ;;  %v1256_v56 = vpack.c.bf16 %v219_v55, %v218_v53  ;;  %v220_v57 = vld [vmem:[#allocation2 + $0x120] sm:$0xff]  ;;  %v221_v58 = vld [vmem:[#allocation2 + $0x128] sm:$0xff]  ;;  %v222_v60 = vld [vmem:[#allocation2 + $0x130] sm:$0xff] }
  0x20   :  { %1236 = vmatpush3.bf16.msra.mxu1 %v1235_v24  ;;  %v1259_v59 = vpack.c.bf16 %v221_v58, %v220_v57  ;;  %v223_v61 = vld [vmem:[#allocation2 + $0x138] sm:$0xff]  ;;  %v224_v63 = vld [vmem:[#allocation2 + $0x140] sm:$0xff]  ;;  %v225_v2 = vld [vmem:[#allocation2 + $0x148] sm:$0xff] }
  0x21   :  { %1237 = vmatprep.subr.bf16.mxu1 %v1433_v0  ;;  %v1262_v62 = vpack.c.bf16 %v223_v61, %v222_v60  ;;  %v1265_v3 = vpack.c.bf16 %v225_v2, %v224_v63  ;;  %v226_v4 = vld [vmem:[#allocation2 + $0x150] sm:$0xff]  ;;  %v227_v5 = vld [vmem:[#allocation2 + $0x158] sm:$0xff]  ;;  %v228_v7 = vld [vmem:[#allocation2 + $0x160] sm:$0xff] }
  0x22   :  { %1215 = vmatpush3.bf16.msra.mxu0 %v1214_v21  ;;  %v1268_v6 = vpack.c.bf16 %v227_v5, %v226_v4  ;;  %v229_v8 = vld [vmem:[#allocation2 + $0x168] sm:$0xff]  ;;  %v780_v10 = vld [vmem:[#allocation2 + $0x78] ss:$0 sm:$0xff]  ;;  %v230_v15 = vld [vmem:[#allocation2 + $0x170] sm:$0xff] }
  0x23   :  { %1216 = vmatprep.subr.bf16.mxu0 %v1433_v0  ;;  %v1271_v9 = vpack.c.bf16 %v229_v8, %v228_v7  ;;  %v231_v16 = vld [vmem:[#allocation2 + $0x178] sm:$0xff]  ;;  %v308_v18 = vld [vmem:[#allocation2 + $0x180] sm:$0xff]  ;;  %v309_v19 = vld [vmem:[#allocation2 + $0x188] sm:$0xff] }
  0x24   :  { %1239 = vmatpush3.bf16.msra.mxu1 %v1238_v30  ;;  %v1274_v17 = vpack.c.bf16 %v231_v16, %v230_v15  ;;  %v310_v20 = vld [vmem:[#allocation2 + $0x190] sm:$0xff]  ;;  %v1277_v21 = vpack.c.bf16 %v309_v19, %v308_v18  ;;  %v311_v22 = vld [vmem:[#allocation2 + $0x198] sm:$0xff]  ;;  %v312_v24 = vld [vmem:[#allocation2 + $0x1a0] sm:$0xff] }
  0x25   :  { %1240 = vmatprep.subr.bf16.mxu1 %v1433_v0  ;;  %v1280_v23 = vpack.c.bf16 %v311_v22, %v310_v20  ;;  %v313_v25 = vld [vmem:[#allocation2 + $0x1a8] sm:$0xff]  ;;  %v315_v28 = vld [vmem:[#allocation2 + $0x1b8] sm:$0xff]  ;;  %v316_v30 = vld [vmem:[#allocation2 + $0x1c0] sm:$0xff] }
  0x26   :  { %1218 = vmatpush3.bf16.msra.mxu0 %v1217_v27  ;;  %v1283_v26 = vpack.c.bf16 %v313_v25, %v312_v24  ;;  %v314_v27 = vld [vmem:[#allocation2 + $0x1b0] sm:$0xff]  ;;  %v317_v31 = vld [vmem:[#allocation2 + $0x1c8] sm:$0xff]  ;;  %v319_v34 = vld [vmem:[#allocation2 + $0x1d8] sm:$0xff] }
  0x27   :  { %1219 = vmatprep.subr.bf16.mxu0 %v1433_v0  ;;  %v1286_v29 = vpack.c.bf16 %v315_v28, %v314_v27  ;;  %v1289_v32 = vpack.c.bf16 %v317_v31, %v316_v30  ;;  %v321_v37 = vld [vmem:[#allocation2 + $0x1e8] sm:$0xff]  ;;  %v322_v44 = vld [vmem:[#allocation2 + $0x1f0] sm:$0xff]  ;;  %v782_v48 = vld [vmem:[#allocation2 + $0x178] ss:$0 sm:$0xff] }
  0x28   :  { %1242 = vmatpush3.bf16.msra.mxu1 %v1241_v36  ;;  %v320_v36 = vld [vmem:[#allocation2 + $0x1e0] sm:$0xff]  ;;  %v409_v57 = vld [vmem:[#allocation2 + $0x218] sm:$0xff]  ;;  %v411_v60 = vld [vmem:[#allocation2 + $0x228] sm:$0xff] }
  0x29   :  { %1243 = vmatprep.subr.bf16.mxu1 %v1433_v0  ;;  %v1295_v38 = vpack.c.bf16 %v321_v37, %v320_v36  ;;  %v406_v53 = vld [vmem:[#allocation2 + $0x200] sm:$0xff]  ;;  %v413_v63 = vld [vmem:[#allocation2 + $0x238] sm:$0xff]  ;;  %v415_v4 = vld [vmem:[#allocation2 + $0x248] sm:$0xff] }
  0x2a   :  { %1221 = vmatpush3.bf16.msra.mxu0 %v1220_v33  ;;  %v318_v33 = vld [vmem:[#allocation2 + $0x1d0] sm:$0xff]  ;;  %v417_v7 = vld [vmem:[#allocation2 + $0x258] sm:$0xff]  ;;  %v498_v15 = vld [vmem:[#allocation2 + $0x280] sm:$0xff] }
  0x2b   :  { %1222 = vmatprep.subr.bf16.mxu0 %v1433_v0  ;;  %v1292_v35 = vpack.c.bf16 %v319_v34, %v318_v33  ;;  %v499_v16 = vld [vmem:[#allocation2 + $0x288] sm:$0xff]  ;;  %v501_v19 = vld [vmem:[#allocation2 + $0x298] sm:$0xff]  ;;  %v504_v24 = vld [vmem:[#allocation2 + $0x2b0] sm:$0xff] }
  0x2c   :  { %1245 = vmatpush3.bf16.msra.mxu1 %v1244_v42  ;;  %v1325_v18 = vpack.c.bf16 %v499_v16, %v498_v15  ;;  %v503_v22 = vld [vmem:[#allocation2 + $0x2a8] sm:$0xff]  ;;  %v505_v25 = vld [vmem:[#allocation2 + $0x2b8] sm:$0xff]  ;;  %v506_v27 = vld [vmem:[#allocation2 + $0x2c0] sm:$0xff] }
  0x2d   :  { %1246 = vmatprep.subr.bf16.mxu1 %v1433_v0  ;;  %v507_v28 = vld [vmem:[#allocation2 + $0x2c8] sm:$0xff]  ;;  %v508_v30 = vld [vmem:[#allocation2 + $0x2d0] sm:$0xff]  ;;  %v509_v31 = vld [vmem:[#allocation2 + $0x2d8] sm:$0xff] }
  0x2e   :  { %1224 = vmatpush3.bf16.msra.mxu0 %v1223_v39  ;;  %v781_v39 = vld [vmem:[#allocation2 + $0xf8] ss:$0 sm:$0xff]  ;;  %v510_v33 = vld [vmem:[#allocation2 + $0x2e0] sm:$0xff]  ;;  %v511_v34 = vld [vmem:[#allocation2 + $0x2e8] sm:$0xff] }
  0x2f   :  { %1225 = vmatprep.subr.bf16.mxu0 %v1433_v0  ;;  %v783_v36 = vld [vmem:[#allocation2 + $0x1f8] ss:$0 sm:$0xff]  ;;  %v604_v16 = vld [vmem:[#allocation2 + $0x370] sm:$0xff] }
  0x30   :  { %1248 = vmatpush3.bf16.msra.mxu1 %v1247_v46 }
  0x31   :  { %1249 = vmatprep.subr.bf16.mxu1 %v1433_v0 }
  0x32   :  { %1227 = vmatpush3.bf16.msra.mxu0 %v1226_v45  ;;  %v323_v45 = vld [vmem:[#allocation2 + $0x1f8] sm:$0xff] }
  0x33   :  { %1252 = vmatprep.subr.bf16.mxu0 %v1433_v0  ;;  %v1298_v46 = vpack.c.bf16 %v323_v45, %v322_v44 }
  0x34   :  { %1251 = vmatpush3.bf16.msra.mxu1 %v1250_v50 }
  0x35   :  { %957 = vmatmul.mubr.f32.vlgmr.msra.gmra.mrb[0].mxu0 %v1485_v47  ;;  %1276 = vmatprep.subr.bf16.mxu1 %v1433_v0 }
  0x36   :  { %1026 = vmatprep.mubr.msk.f32.mxu0 %vm1434_vm0, %v1435_v1  ;;  %1254 = vmatpush3.bf16.msra.mxu0 %v1253_v54  ;;  %v407_v54 = vld [vmem:[#allocation2 + $0x208] sm:$0xff] }
  0x37   :  { %1255 = vmatprep.subr.bf16.mxu0 %v1433_v0  ;;  %v1301_v55 = vpack.c.bf16 %v407_v54, %v406_v53  ;;  %v590_v53 = vld [vmem:[#allocation2 + $0x300] sm:$0xff]  ;;  %v591_v54 = vld [vmem:[#allocation2 + $0x308] sm:$0xff] }
  0x3a   :  { %1257 = vmatpush3.bf16.msra.mxu0 %v1256_v56  ;;  %v408_v56 = vld [vmem:[#allocation2 + $0x210] sm:$0xff] }
  0x3b   :  { %1258 = vmatprep.subr.bf16.mxu0 %v1433_v0  ;;  %v1304_v58 = vpack.c.bf16 %v409_v57, %v408_v56  ;;  %v593_v56 = vld [vmem:[#allocation2 + $0x318] sm:$0xff] }
  0x3e   :  { %1260 = vmatpush3.bf16.msra.mxu0 %v1259_v59  ;;  %v410_v59 = vld [vmem:[#allocation2 + $0x220] sm:$0xff] }
  0x3f   :  { %1261 = vmatprep.subr.bf16.mxu0 %v1433_v0  ;;  %v1307_v61 = vpack.c.bf16 %v411_v60, %v410_v59  ;;  %v595_v59 = vld [vmem:[#allocation2 + $0x328] sm:$0xff] }
  0x42   :  { %1263 = vmatpush3.bf16.msra.mxu0 %v1262_v62  ;;  %v412_v62 = vld [vmem:[#allocation2 + $0x230] sm:$0xff] }
  0x43   :  { %1264 = vmatprep.subr.bf16.mxu0 %v1433_v0  ;;  %v1310_v2 = vpack.c.bf16 %v413_v63, %v412_v62  ;;  %v597_v62 = vld [vmem:[#allocation2 + $0x338] sm:$0xff] }
  0x46   :  { %1266 = vmatpush3.bf16.msra.mxu0 %v1265_v3  ;;  %v414_v3 = vld [vmem:[#allocation2 + $0x240] sm:$0xff] }
  0x47   :  { %1267 = vmatprep.subr.bf16.mxu0 %v1433_v0  ;;  %v1313_v5 = vpack.c.bf16 %v415_v4, %v414_v3  ;;  %v599_v3 = vld [vmem:[#allocation2 + $0x348] sm:$0xff] }
  0x4a   :  { %1269 = vmatpush3.bf16.msra.mxu0 %v1268_v6  ;;  %v416_v6 = vld [vmem:[#allocation2 + $0x250] sm:$0xff] }
  0x4b   :  { %1270 = vmatprep.subr.bf16.mxu0 %v1433_v0  ;;  %v1316_v8 = vpack.c.bf16 %v417_v7, %v416_v6  ;;  %v601_v6 = vld [vmem:[#allocation2 + $0x358] sm:$0xff] }
  0x4e   :  { %1272 = vmatpush3.bf16.msra.mxu0 %v1271_v9  ;;  %v418_v9 = vld [vmem:[#allocation2 + $0x260] sm:$0xff] }
  0x4f   :  { %1273 = vmatprep.subr.bf16.mxu0 %v1433_v0 }
  0x52   :  { %1275 = vmatpush3.bf16.msra.mxu0 %v1274_v17  ;;  %v500_v17 = vld [vmem:[#allocation2 + $0x290] sm:$0xff] }
  0x53   :  { %1300 = vmatprep.subr.bf16.mxu0 %v1433_v0  ;;  %v1328_v20 = vpack.c.bf16 %v501_v19, %v500_v17  ;;  %v605_v17 = vld [vmem:[#allocation2 + $0x378] sm:$0xff]  ;;  %v682_v19 = vld [vmem:[#allocation2 + $0x380] sm:$0xff] }
 0x108   :  { %v119_v11 = vpop.f32.mrb[0].mxu0 }
 0x109   :  { %v120_v12 = vadd.f32 %v780_v10, %v119_v11  ;;  %v958_v13 = vpop.f32.mrb[1].mxu0  ;;  %v419_v10 = vld [vmem:[#allocation2 + $0x268] sm:$0xff] }
 0x10a   :  { %v1319_v11 = vpack.c.bf16 %v419_v10, %v418_v9  ;;  %v421_v13 = vld [vmem:[#allocation2 + $0x278] sm:$0xff]  ;;  %v603_v9 = vld [vmem:[#allocation2 + $0x368] sm:$0xff] }
 0x10b   :  { %v123_v14 = vmax.f32 %v120_v12, 0.0  ;;  %v420_v12 = vld [vmem:[#allocation2 + $0x270] sm:$0xff] }
 0x10d   :  { %992 = vmatmul.mubr.f32.vlgmr.msra.gmra.mrb[0].mxu1 %v123_v14  ;;  %v1322_v14 = vpack.c.bf16 %v421_v13, %v420_v12 }
 0x10e   :  { %1061 = vmatprep.mubr.msk.f32.mxu1 %vm1434_vm0, %v1435_v1  ;;  %1278 = vmatpush3.bf16.msra.mxu1 %v1277_v21  ;;  %v502_v21 = vld [vmem:[#allocation2 + $0x2a0] sm:$0xff] }
 0x10f   :  { %1279 = vmatprep.subr.bf16.mxu1 %v1433_v0 }
 0x112   :  { %1281 = vmatpush3.bf16.msra.mxu1 %v1280_v23  ;;  %v1331_v23 = vpack.c.bf16 %v503_v22, %v502_v21  ;;  %v684_v21 = vld [vmem:[#allocation2 + $0x390] sm:$0xff] }
 0x113   :  { %1282 = vmatprep.subr.bf16.mxu1 %v1433_v0 }
 0x116   :  { %1284 = vmatpush3.bf16.msra.mxu1 %v1283_v26  ;;  %v1334_v26 = vpack.c.bf16 %v505_v25, %v504_v24  ;;  %v686_v25 = vld [vmem:[#allocation2 + $0x3a0] sm:$0xff] }
 0x117   :  { %1285 = vmatprep.subr.bf16.mxu1 %v1433_v0 }
 0x11a   :  { %1287 = vmatpush3.bf16.msra.mxu1 %v1286_v29  ;;  %v1337_v29 = vpack.c.bf16 %v507_v28, %v506_v27  ;;  %v689_v28 = vld [vmem:[#allocation2 + $0x3b8] sm:$0xff] }
 0x11b   :  { %1288 = vmatprep.subr.bf16.mxu1 %v1433_v0 }
 0x11e   :  { %1290 = vmatpush3.bf16.msra.mxu1 %v1289_v32  ;;  %v1340_v32 = vpack.c.bf16 %v509_v31, %v508_v30  ;;  %v690_v30 = vld [vmem:[#allocation2 + $0x3c0] sm:$0xff]  ;;  %v691_v31 = vld [vmem:[#allocation2 + $0x3c8] sm:$0xff] }
 0x11f   :  { %1291 = vmatprep.subr.bf16.mxu1 %v1433_v0 }
 0x122   :  { %1293 = vmatpush3.bf16.msra.mxu1 %v1292_v35  ;;  %v1343_v35 = vpack.c.bf16 %v511_v34, %v510_v33  ;;  %v692_v33 = vld [vmem:[#allocation2 + $0x3d0] sm:$0xff]  ;;  %v693_v34 = vld [vmem:[#allocation2 + $0x3d8] sm:$0xff] }
 0x123   :  { %1294 = vmatprep.subr.bf16.mxu1 %v1433_v0 }
 0x126   :  { %1296 = vmatpush3.bf16.msra.mxu1 %v1295_v38 }
 0x127   :  { %1297 = vmatprep.subr.bf16.mxu1 %v1433_v0 }
 0x12a   :  { %1299 = vmatpush3.bf16.msra.mxu1 %v1298_v46 }
 0x12b   :  { %1324 = vmatprep.subr.bf16.mxu1 %v1433_v0 }
 0x1e0   :  { %v211_v40 = vpop.f32.mrb[0].mxu1 }
 0x1e1   :  { %v212_v41 = vadd.f32 %v781_v39, %v211_v40  ;;  %v993_v42 = vpop.f32.mrb[1].mxu1  ;;  %v26_v40 = vlaneseq }
 0x1e3   :  { %v215_v43 = vmax.f32 %v212_v41, 0.0 }
 0x1e5   :  { %1027 = vmatmul.mubr.f32.vlgmr.msra.gmra.mrb[2].mxu0 %v215_v43  ;;  %v27_v43 = vand.u32 127, %v26_v40 }
 0x1e6   :  { %1096 = vmatprep.mubr.msk.f32.mxu0 %vm1434_vm0, %v1435_v1  ;;  %1302 = vmatpush3.bf16.msra.mxu0 %v1301_v55  ;;  %v592_v55 = vld [vmem:[#allocation2 + $0x310] sm:$0xff] }
 0x1e7   :  { %1303 = vmatprep.subr.bf16.mxu0 %v1433_v0  ;;  %vm28_vm1 = vcmp.ge.s32.totalorder %v27_v43, 8  ;;  %vm29_vm2 = vcmp.lt.s32.totalorder %v27_v43, 16  ;;  %vm400_vm4 = vcmp.lt.s32.totalorder %v27_v43, 8  ;;  %v1352_v57 = vpack.c.bf16 %v593_v56, %v592_v55 }
 0x1e8   :  { %vm30_vm3 = vmand %vm28_vm1, %vm29_vm2 }
 0x1e9   :  { %v31_v44 = vsel %vm30_vm3, %v1485_v47, 0.0  ;;  %v1349_v47 = vpack.c.bf16 %v591_v54, %v590_v53  ;;  %v787_v54 = vld [vmem:[#allocation2 + $0x3f8] ss:$0 sm:$0xff] }
 0x1ea   :  { %1305 = vmatpush3.bf16.msra.mxu0 %v1304_v58  ;;  %v594_v58 = vld [vmem:[#allocation2 + $0x320] sm:$0xff] }
 0x1eb   :  { %1306 = vmatprep.subr.bf16.mxu0 %v1433_v0  ;;  %v1355_v60 = vpack.c.bf16 %v595_v59, %v594_v58 }
 0x1ee   :  { %1308 = vmatpush3.bf16.msra.mxu0 %v1307_v61  ;;  %v596_v61 = vld [vmem:[#allocation2 + $0x330] sm:$0xff] }
 0x1ef   :  { %1309 = vmatprep.subr.bf16.mxu0 %v1433_v0  ;;  %v1358_v63 = vpack.c.bf16 %v597_v62, %v596_v61 }
 0x1f2   :  { %1311 = vmatpush3.bf16.msra.mxu0 %v1310_v2  ;;  %v598_v2 = vld [vmem:[#allocation2 + $0x340] sm:$0xff] }
 0x1f3   :  { %1312 = vmatprep.subr.bf16.mxu0 %v1433_v0  ;;  %v1361_v4 = vpack.c.bf16 %v599_v3, %v598_v2 }
 0x1f6   :  { %1314 = vmatpush3.bf16.msra.mxu0 %v1313_v5  ;;  %v600_v5 = vld [vmem:[#allocation2 + $0x350] sm:$0xff] }
 0x1f7   :  { %1315 = vmatprep.subr.bf16.mxu0 %v1433_v0  ;;  %v1364_v7 = vpack.c.bf16 %v601_v6, %v600_v5 }
 0x1fa   :  { %1317 = vmatpush3.bf16.msra.mxu0 %v1316_v8  ;;  %v602_v8 = vld [vmem:[#allocation2 + $0x360] sm:$0xff] }
 0x1fb   :  { %1318 = vmatprep.subr.bf16.mxu0 %v1433_v0  ;;  %v1367_v10 = vpack.c.bf16 %v603_v9, %v602_v8 }
 0x1fe   :  { %1320 = vmatpush3.bf16.msra.mxu0 %v1319_v11  ;;  %v784_v11 = vld [vmem:[#allocation2 + $0x278] ss:$0 sm:$0xff] }
 0x1ff   :  { %1321 = vmatprep.subr.bf16.mxu0 %v1433_v0 }
 0x202   :  { %1323 = vmatpush3.bf16.msra.mxu0 %v1322_v14 }
 0x203   :  { %1348 = vmatprep.subr.bf16.mxu0 %v1433_v0 }
 0x2b8   :  { %v303_v49 = vpop.f32.mrb[2].mxu0 }
 0x2b9   :  { %v304_v50 = vadd.f32 %v782_v48, %v303_v49  ;;  %v1028_v51 = vpop.f32.mrb[3].mxu0 }
 0x2ba   :  { %v513_v51 = vld [vmem:[#allocation2 + $0x2f8] sm:$0xff] }
 0x2bb   :  { %v307_v52 = vmax.f32 %v304_v50, 0.0  ;;  %v512_v50 = vld [vmem:[#allocation2 + $0x2f0] sm:$0xff] }
 0x2bd   :  { %1062 = vmatmul.mubr.f32.vlgmr.msra.gmra.mrb[2].mxu1 %v307_v52  ;;  %v1346_v52 = vpack.c.bf16 %v513_v51, %v512_v50 }
 0x2be   :  { %1131 = vmatprep.mubr.msk.f32.mxu1 %vm1434_vm0, %v1435_v1  ;;  %1326 = vmatpush3.bf16.msra.mxu1 %v1325_v18  ;;  %v1370_v18 = vpack.c.bf16 %v605_v17, %v604_v16 }
 0x2bf   :  { %1327 = vmatprep.subr.bf16.mxu1 %v1433_v0 }
 0x2c2   :  { %1329 = vmatpush3.bf16.msra.mxu1 %v1328_v20  ;;  %v683_v20 = vld [vmem:[#allocation2 + $0x388] sm:$0xff] }
 0x2c3   :  { %1330 = vmatprep.subr.bf16.mxu1 %v1433_v0  ;;  %v1373_v22 = vpack.c.bf16 %v683_v20, %v682_v19 }
 0x2c6   :  { %1332 = vmatpush3.bf16.msra.mxu1 %v1331_v23  ;;  %v685_v23 = vld [vmem:[#allocation2 + $0x398] sm:$0xff] }
 0x2c7   :  { %1333 = vmatprep.subr.bf16.mxu1 %v1433_v0  ;;  %v1376_v24 = vpack.c.bf16 %v685_v23, %v684_v21 }
 0x2ca   :  { %1335 = vmatpush3.bf16.msra.mxu1 %v1334_v26  ;;  %v687_v26 = vld [vmem:[#allocation2 + $0x3a8] sm:$0xff] }
 0x2cb   :  { %1336 = vmatprep.subr.bf16.mxu1 %v1433_v0  ;;  %v1379_v27 = vpack.c.bf16 %v687_v26, %v686_v25 }
 0x2ce   :  { %1338 = vmatpush3.bf16.msra.mxu1 %v1337_v29 }
 0x2cf   :  { %1339 = vmatprep.subr.bf16.mxu1 %v1433_v0 }
 0x2d2   :  { %1341 = vmatpush3.bf16.msra.mxu1 %v1340_v32  ;;  %v1385_v32 = vpack.c.bf16 %v691_v31, %v690_v30 }
 0x2d3   :  { %1342 = vmatprep.subr.bf16.mxu1 %v1433_v0 }
 0x2d6   :  { %1344 = vmatpush3.bf16.msra.mxu1 %v1343_v35  ;;  %v1388_v35 = vpack.c.bf16 %v693_v34, %v692_v33 }
 0x2d7   :  { %1345 = vmatprep.subr.bf16.mxu1 %v1433_v0 }
 0x2da   :  { %1347 = vmatpush3.bf16.msra.mxu1 %v1346_v52 }
 0x2db   :  { %1372 = vmatprep.subr.bf16.mxu1 %v1433_v0 }
 0x390   :  { %v395_v37 = vpop.f32.mrb[2].mxu1 }
 0x391   :  { %v396_v38 = vadd.f32 %v783_v36, %v395_v37  ;;  %v1063_v39 = vpop.f32.mrb[3].mxu1  ;;  %v694_v36 = vld [vmem:[#allocation2 + $0x3e0] sm:$0xff]  ;;  %v695_v37 = vld [vmem:[#allocation2 + $0x3e8] sm:$0xff] }
 0x392   :  { %v785_v39 = vld [vmem:[#allocation2 + $0x2f8] ss:$0 sm:$0xff] }
 0x393   :  { %1402 = vtanh.f32 %v396_v38  ;;  %v1391_v38 = vpack.c.bf16 %v695_v37, %v694_v36 }
 0x39d   :  { %v1530_v41 = vpop.eup %1402 }
 0x39e   :  { %v402_v42 = vmul.f32 1.442695, %v1530_v41  ;;  %v401_v48 = vsel %vm400_vm4, %v1530_v41, 0.0 }
 0x3a0   :  { %1404 = vpow2.f32 %v402_v42 }
 0x3aa   :  { %v1405_v45 = vpop.eup %1404 }
 0x3ab   :  { %v404_v46 = vmul.f32 %v1405_v45, %v31_v44  ;;  %v696_v45 = vld [vmem:[#allocation2 + $0x3f0] sm:$0xff] }
 0x3ad   :  { %v405_v49 = vadd.f32 %v404_v46, %v401_v48  ;;  %v697_v46 = vld [vmem:[#allocation2 + $0x3f8] sm:$0xff] }
 0x3ae   :  { %v1394_v48 = vpack.c.bf16 %v697_v46, %v696_v45 }
 0x3af   :  { %1097 = vmatmul.mubr.f32.vlgmr.msra.gmra.mrb[4].mxu0 %v405_v49  ;;  %v786_v49 = vld [vmem:[#allocation2 + $0x378] ss:$0 sm:$0xff] }
 0x3b0   :  { %1166 = vmatprep.mubr.msk.f32.mxu0 %vm1434_vm0, %v1435_v1  ;;  %1350 = vmatpush3.bf16.msra.mxu0 %v1349_v47 }
 0x3b1   :  { %1351 = vmatprep.subr.bf16.mxu0 %v1433_v0 }
 0x3b4   :  { %1353 = vmatpush3.bf16.msra.mxu0 %v1352_v57 }
 0x3b5   :  { %1354 = vmatprep.subr.bf16.mxu0 %v1433_v0 }
 0x3b8   :  { %1356 = vmatpush3.bf16.msra.mxu0 %v1355_v60 }
 0x3b9   :  { %1357 = vmatprep.subr.bf16.mxu0 %v1433_v0 }
 0x3bc   :  { %1359 = vmatpush3.bf16.msra.mxu0 %v1358_v63 }
 0x3bd   :  { %1360 = vmatprep.subr.bf16.mxu0 %v1433_v0 }
 0x3c0   :  { %1362 = vmatpush3.bf16.msra.mxu0 %v1361_v4 }
 0x3c1   :  { %1363 = vmatprep.subr.bf16.mxu0 %v1433_v0 }
 0x3c4   :  { %1365 = vmatpush3.bf16.msra.mxu0 %v1364_v7 }
 0x3c5   :  { %1366 = vmatprep.subr.bf16.mxu0 %v1433_v0 }
 0x3c8   :  { %1368 = vmatpush3.bf16.msra.mxu0 %v1367_v10 }
 0x3c9   :  { %1369 = vmatprep.subr.bf16.mxu0 %v1433_v0 }
 0x3cc   :  { %1371 = vmatpush3.bf16.msra.mxu0 %v1370_v18 }
 0x482   :  { %v493_v12 = vpop.f32.mrb[4].mxu0 }
 0x483   :  { %v494_v13 = vadd.f32 %v784_v11, %v493_v12  ;;  %v1098_v14 = vpop.f32.mrb[5].mxu0 }
 0x485   :  { %v497_v15 = vmax.f32 %v494_v13, 0.0 }
 0x487   :  { %1132 = vmatmul.mubr.f32.vlgmr.msra.gmra.mrb[4].mxu1 %v497_v15 }
 0x488   :  { %1201 = vmatprep.mubr.msk.f32.mxu1 %vm1434_vm0, %v1435_v1  ;;  %1374 = vmatpush3.bf16.msra.mxu1 %v1373_v22  ;;  %v688_v1 = vld [vmem:[#allocation2 + $0x3b0] sm:$0xff] }
 0x489   :  { %1375 = vmatprep.subr.bf16.mxu1 %v1433_v0  ;;  %v1382_v29 = vpack.c.bf16 %v689_v28, %v688_v1 }
 0x48c   :  { %1377 = vmatpush3.bf16.msra.mxu1 %v1376_v24 }
 0x48d   :  { %1378 = vmatprep.subr.bf16.mxu1 %v1433_v0 }
 0x490   :  { %1380 = vmatpush3.bf16.msra.mxu1 %v1379_v27 }
 0x491   :  { %1381 = vmatprep.subr.bf16.mxu1 %v1433_v0 }
 0x494   :  { %1383 = vmatpush3.bf16.msra.mxu1 %v1382_v29 }
 0x495   :  { %1384 = vmatprep.subr.bf16.mxu1 %v1433_v0 }
 0x498   :  { %1386 = vmatpush3.bf16.msra.mxu1 %v1385_v32 }
 0x499   :  { %1387 = vmatprep.subr.bf16.mxu1 %v1433_v0 }
 0x49c   :  { %1389 = vmatpush3.bf16.msra.mxu1 %v1388_v35 }
 0x49d   :  { %1390 = vmatprep.subr.bf16.mxu1 %v1433_v0 }
 0x4a0   :  { %1392 = vmatpush3.bf16.msra.mxu1 %v1391_v38 }
 0x4a1   :  { %1393 = vmatprep.subr.bf16.mxu1 %v1433_v0 }
 0x4a4   :  { %1395 = vmatpush3.bf16.msra.mxu1 %v1394_v48 }
 0x55a   :  { %v585_v40 = vpop.f32.mrb[4].mxu1 }
 0x55b   :  { %v586_v42 = vadd.f32 %v785_v39, %v585_v40  ;;  %v1133_v43 = vpop.f32.mrb[5].mxu1 }
 0x55d   :  { %v589_v44 = vmax.f32 %v586_v42, 0.0 }
 0x55f   :  { %1167 = vmatmul.mubr.f32.vlgmr.msra.gmra.mrb[6].mxu0 %v589_v44 }
 0x632   :  { %v677_v50 = vpop.f32.mrb[6].mxu0 }
 0x633   :  { %v678_v51 = vadd.f32 %v786_v49, %v677_v50  ;;  %v1168_v52 = vpop.f32.mrb[7].mxu0 }
 0x635   :  { %v681_v53 = vmax.f32 %v678_v51, 0.0 }
 0x637   :  { %1202 = vmatmul.mubr.f32.vlgmr.msra.gmra.mrb[6].mxu1 %v681_v53 }
 0x70a   :  { %v769_v55 = vpop.f32.mrb[6].mxu1 }
 0x70b   :  { %v770_v47 = vadd.f32 %v787_v54, %v769_v55  ;;  %v1203_v0 = vpop.f32.mrb[7].mxu1 }
 0x70d   :  { %v773_v56 = vadd.f32 %v1530_v41, %v770_v47 }
 0x70f   :  { %774 = vst [vmem:[%s1560_s2] sm:$0x3] %v773_v56 }
 0x710   :  { %779 = vsyncpa [#allocation3], 1 }

</bundles_post_ra>
